<compile_context>
chip_gen: v7x
topology: tpu7x:2x2x1
jax: 0.10.0
libtpu: 0.0.40
codegen_flags: <defaults>
</compile_context>

<pallas_src>
import functools

import jax
import jax.numpy as jnp
from jax import lax
from jax.experimental import pallas as pl
from jax.experimental.pallas import tpu as pltpu


# ----------------------------------------------------------------------------- #
# HGRN recurrent layer kernel: fused gate matmul + gated linear recurrence + proj
# Grid axis 0 iterates time chunks sequentially; the running state lives in a
# small VMEM scratch across chunks and in loop-carry vregs within a chunk.
# ----------------------------------------------------------------------------- #
def hgrn_layer_kernel(x_ref, h0_ref, wifg_ref, wo_ref,      # inputs
                      out_ref, hT_ref,                       # outputs
                      lam_s, inp_s, g_s, h_carry,            # scratch
                      *, gamma, B, t_chunk, H, use_tile_path, unroll):
    chunk = pl.program_id(0)

    @pl.when(chunk == 0)
    def _():
        h_carry[...] = h0_ref[...].astype(jnp.float32)

    # ---- fused gate projections on the MXU (bf16 in, f32 accumulate) ---------
    x_bf = x_ref[...]                                          # [R, H] bf16
    gates = jnp.dot(x_bf, wifg_ref[...],
                    preferred_element_type=jnp.float32)        # [R, 3H] f32
    i_pre = gates[:, :H]
    f_pre = gates[:, H:2 * H]
    g_pre = gates[:, 2 * H:]

    lam = gamma + (1.0 - gamma) * jax.nn.sigmoid(f_pre)        # lower-bounded forget
    lam_s[...] = lam
    inp_s[...] = (1.0 - lam) * jax.nn.silu(i_pre)
    g_s[...] = jax.nn.sigmoid(g_pre)                           # reused below for g*h

    # ---- sequential linear recurrence; state carried in registers ------------
    h0 = h_carry[...]                                          # [B, H] f32

    if use_tile_path:
        # Walk full (8, 128) sublane tiles: 8 // B timesteps per iteration,
        # statically unrolled; one unmasked load/store per buffer per tile.
        steps = 8 // B
        n_tiles = (t_chunk * B) // 8

        def tile_body(tile, h):
            r = pl.multiple_of(tile * 8, 8)
            lam_t = lam_s[pl.ds(r, 8), :]
            inp_t = inp_s[pl.ds(r, 8), :]
            g_t = g_s[pl.ds(r, 8), :]
            gh_rows = []
            for s in range(steps):                              # static unroll
                lo, hi = s * B, (s + 1) * B
                h = lam_t[lo:hi] * h + inp_t[lo:hi]
                gh_rows.append(g_t[lo:hi] * h)
            g_s[pl.ds(r, 8), :] = jnp.concatenate(gh_rows, axis=0)  # in-place reuse
            return h

        h_fin = lax.fori_loop(0, n_tiles, tile_body, h0, unroll=unroll)
    else:
        # Fallback (B >= 8 or non-tile-aligned chunk): one timestep per step.
        def step_body(t, h):
            r = t * B
            h = lam_s[pl.ds(r, B), :] * h + inp_s[pl.ds(r, B), :]
            g_s[pl.ds(r, B), :] = g_s[pl.ds(r, B), :] * h
            return h

        h_fin = lax.fori_loop(0, t_chunk, step_body, h0, unroll=unroll)

    h_carry[...] = h_fin
    hT_ref[...] = h_fin.astype(hT_ref.dtype)   # resident block; last chunk wins

    # ---- output projection + residual -----------------------------------------
    o = jnp.dot(g_s[...].astype(jnp.bfloat16), wo_ref[...],
                preferred_element_type=jnp.float32)
    out_ref[...] = (x_bf.astype(jnp.float32) + o).astype(out_ref.dtype)


def hgrn_layer(x, h0, w_ifg, wo, *, gamma, B, T, t_chunk):
    N, H = x.shape                                  # N = T * B, time-major rows
    R = t_chunk * B                                 # rows per chunk
    n_chunks = T // t_chunk

    use_tile = (R % 8 == 0) and (B < 8) and (8 % B == 0)
    n_inner = (R // 8) if use_tile else t_chunk
    unroll = True if n_inner <= 8 else 4

    kernel = functools.partial(
        hgrn_layer_kernel, gamma=gamma, B=B, t_chunk=t_chunk, H=H,
        use_tile_path=use_tile, unroll=unroll)

    out, hT = pl.pallas_call(
        kernel,
        out_shape=(jax.ShapeDtypeStruct((N, H), jnp.bfloat16),
                   jax.ShapeDtypeStruct((B, H), jnp.float32)),
        grid_spec=pltpu.PrefetchScalarGridSpec(
            num_scalar_prefetch=0,
            grid=(n_chunks,),
            in_specs=[pl.BlockSpec((R, H), lambda c: (c, 0)),        # x chunk
                      pl.BlockSpec((B, H), lambda c: (0, 0)),        # h0
                      pl.BlockSpec((H, 3 * H), lambda c: (0, 0)),    # fused wi|wf|wg
                      pl.BlockSpec((H, H), lambda c: (0, 0))],       # wo
            out_specs=(pl.BlockSpec((R, H), lambda c: (c, 0)),       # y chunk
                       pl.BlockSpec((B, H), lambda c: (0, 0))),      # h_T (resident)
            scratch_shapes=[pltpu.VMEM((R, H), jnp.float32),   # lam
                            pltpu.VMEM((R, H), jnp.float32),   # input branch
                            pltpu.VMEM((R, H), jnp.float32),   # out gate / g*h (reused)
                            pltpu.VMEM((B, H), jnp.float32)],  # state across chunks
        ),
        compiler_params=pltpu.CompilerParams(
            dimension_semantics=("arbitrary",)),
    )(x, h0, w_ifg, wo)
    return out, hT


# ----------------------------------------------------------------------------- #
# Prediction head kernel: [B*T, H] @ [H, V] + b, tiled over the vocab dimension.
# ----------------------------------------------------------------------------- #
def head_kernel(x_ref, w_ref, b_ref, o_ref):
    o_ref[...] = (jnp.dot(x_ref[...], w_ref[...],
                          preferred_element_type=jnp.float32)
                  + b_ref[...]).astype(o_ref.dtype)


def prediction_head(x, w, b):
    N, H = x.shape
    V = w.shape[1]
    tv = V
    for cand in (1024, 512, 256, 128):              # widest lane-dense tile that divides V
        if V % cand == 0:
            tv = cand
            break
    return pl.pallas_call(
        head_kernel,
        out_shape=jax.ShapeDtypeStruct((N, V), jnp.float32),
        grid_spec=pltpu.PrefetchScalarGridSpec(
            num_scalar_prefetch=0,
            grid=(V // tv,),
            in_specs=[pl.BlockSpec((N, H), lambda j: (0, 0)),
                      pl.BlockSpec((H, tv), lambda j: (0, j)),
                      pl.BlockSpec((1, tv), lambda j: (0, j))],
            out_specs=pl.BlockSpec((N, tv), lambda j: (0, j)),
        ),
        compiler_params=pltpu.CompilerParams(dimension_semantics=("parallel",)),
    )(x, w, b.reshape(1, V))


# ----------------------------------------------------------------------------- #
# Full model wrapper (embedding gather + layer stack + LM head).
# ----------------------------------------------------------------------------- #
def _choose_t_chunk(T, B, target_rows=512):
    """Largest time chunk whose row count is (8,128)-tile aligned and <= target."""
    best = None
    for tc in range(1, T + 1):
        if T % tc:
            continue
        rows = tc * B
        if rows % 8 == 0 and rows <= target_rows:
            best = tc
    return best if best is not None else T


def small_hgrn_lm(params, input_ids, hidden=None):
    B, T = input_ids.shape
    emb = params["embedding"]
    H = emb.shape[1]
    L = len(params["layers"])

    if hidden is None:
        hidden = jnp.zeros((L, B, H), jnp.float32)

    # Time-major embedding gather: transpose the tiny int id matrix, not the
    # activation tensor.  Rows of x are (t*B + b).  Inter-layer dtype is bf16.
    ids_tm = input_ids.T                                             # [T, B]
    x = jnp.take(emb, ids_tm, axis=0).reshape(T * B, H).astype(jnp.bfloat16)

    t_chunk = _choose_t_chunk(T, B)

    new_hidden = []
    for l, lp in enumerate(params["layers"]):
        gamma = float(l) / float(L)   # per-layer forget-gate lower bound
        x, hT = hgrn_layer(x, hidden[l].astype(jnp.float32),
                           lp["w_ifg"], lp["wo"],
                           gamma=gamma, B=B, T=T, t_chunk=t_chunk)
        new_hidden.append(hT)

    # Single activation permute back to batch-major before the head (logits are
    # much wider than H, so permuting activations here is the cheap direction).
    out_bt = jnp.transpose(x.reshape(T, B, H), (1, 0, 2)).reshape(B * T, H)

    logits = prediction_head(out_bt, params["w_head"], params["b_head"])
    logits = logits.reshape(B, T, -1)                                # [B, T, V]
    return logits, jnp.stack(new_hidden, axis=0)                     # hidden: [L, B, H]


# ----------------------------------------------------------------------------- #
# Deterministic parameter init (synthetic, small shapes).  Gate weights are
# fused host-side into a single [H, 3H] bf16 matrix per layer.
# ----------------------------------------------------------------------------- #
def init_params(key, vocab_size, hidden_size, num_layers):
    keys = jax.random.split(key, 2 + 4 * num_layers)
    params = {
        "embedding": jax.random.normal(keys[0], (vocab_size, hidden_size),
                                       jnp.float32) * 0.02,
        "w_head": (jax.random.normal(keys[1], (hidden_size, vocab_size),
                                     jnp.float32) * 0.02).astype(jnp.bfloat16),
        "b_head": jnp.zeros((vocab_size,), jnp.float32),
        "layers": [],
    }
    for l in range(num_layers):
        k = keys[2 + 4 * l: 2 + 4 * (l + 1)]
        wi = jax.random.normal(k[0], (hidden_size, hidden_size), jnp.float32) * 0.05
        wf = jax.random.normal(k[1], (hidden_size, hidden_size), jnp.float32) * 0.05
        wg = jax.random.normal(k[2], (hidden_size, hidden_size), jnp.float32) * 0.05
        wo = jax.random.normal(k[3], (hidden_size, hidden_size), jnp.float32) * 0.05
        params["layers"].append({
            "w_ifg": jnp.concatenate([wi, wf, wg], axis=1).astype(jnp.bfloat16),
            "wo": wo.astype(jnp.bfloat16),
        })
    return params


if __name__ == "__main__":
    # Small shapes consistent with the module (hidden matches spec; vocab scaled down).
    VOCAB, HIDDEN, LAYERS = 1024, 256, 2
    BATCH, SEQ = 2, 8

    key = jax.random.PRNGKey(0)
    pkey, dkey = jax.random.split(key)
    params = init_params(pkey, VOCAB, HIDDEN, LAYERS)

    input_ids = jax.random.randint(dkey, (BATCH, SEQ), 0, VOCAB, dtype=jnp.int32)

    logits, hidden = small_hgrn_lm(params, input_ids, hidden=None)
    jax.block_until_ready((logits, hidden))

    assert logits.shape == (BATCH, SEQ, VOCAB)
    assert hidden.shape == (LAYERS, BATCH, HIDDEN)
    assert bool(jnp.all(jnp.isfinite(logits)))
    print("KERNEL_OK")
</pallas_src>

<mosaic_0001>
module attributes {stable_mosaic.version = 11 : i64} {
  func.func @hgrn_layer_kernel(%arg0: i32, %arg1: memref<16x256xbf16, #tpu.memory_space<vmem>>, %arg2: memref<2x256xf32, #tpu.memory_space<vmem>>, %arg3: memref<256x768xbf16, #tpu.memory_space<vmem>>, %arg4: memref<256x256xbf16, #tpu.memory_space<vmem>>, %arg5: memref<16x256xbf16, #tpu.memory_space<vmem>>, %arg6: memref<2x256xf32, #tpu.memory_space<vmem>>, %arg7: memref<16x256xf32, #tpu.memory_space<vmem>>, %arg8: memref<16x256xf32, #tpu.memory_space<vmem>>, %arg9: memref<16x256xf32, #tpu.memory_space<vmem>>, %arg10: memref<2x256xf32, #tpu.memory_space<vmem>>) attributes {dimension_semantics = [#tpu.dimension_semantics<arbitrary>], iteration_bounds = array<i64: 1>, scalar_prefetch = 0 : i64, scratch_operands = 4 : i64, tpu.core_type = #tpu.core_type<tc>, window_params = [{transform_indices = @transform_0, window_bounds = array<i64: 16, 256>}, {pipeline_mode = #tpu.pipeline_mode<synchronous>, transform_indices = @transform_1, window_bounds = array<i64: 2, 256>}, {pipeline_mode = #tpu.pipeline_mode<synchronous>, transform_indices = @transform_2, window_bounds = array<i64: 256, 768>}, {pipeline_mode = #tpu.pipeline_mode<synchronous>, transform_indices = @transform_3, window_bounds = array<i64: 256, 256>}, {transform_indices = @transform_4, window_bounds = array<i64: 16, 256>}, {pipeline_mode = #tpu.pipeline_mode<synchronous>, transform_indices = @transform_5, window_bounds = array<i64: 2, 256>}]} {
    %c0_i32 = arith.constant 0 : i32
    %0 = arith.cmpi eq, %arg0, %c0_i32 : i32
    %1 = arith.extui %0 : i1 to i32
    %c0_i32_0 = arith.constant 0 : i32
    %2 = arith.cmpi ne, %1, %c0_i32_0 : i32
    scf.if %2 {
      %c0_39 = arith.constant 0 : index
      %c0_40 = arith.constant 0 : index
      %116 = vector.load %arg2[%c0_39, %c0_40] : memref<2x256xf32, #tpu.memory_space<vmem>>, vector<2x256xf32>
      %c0_41 = arith.constant 0 : index
      %c0_42 = arith.constant 0 : index
      %117 = vector.load %arg10[%c0_41, %c0_42] : memref<2x256xf32, #tpu.memory_space<vmem>>, vector<2x256xf32>
      tpu.vector_store %arg10[%c0_41, %c0_42], %116 {strides = array<i32>} : memref<2x256xf32, #tpu.memory_space<vmem>>, vector<2x256xf32>,
    } else {
    }
    %c0 = arith.constant 0 : index
    %c0_1 = arith.constant 0 : index
    %3 = vector.load %arg1[%c0, %c0_1] : memref<16x256xbf16, #tpu.memory_space<vmem>>, vector<16x256xbf16>
    %c0_2 = arith.constant 0 : index
    %c0_3 = arith.constant 0 : index
    %4 = vector.load %arg3[%c0_2, %c0_3] : memref<256x768xbf16, #tpu.memory_space<vmem>>, vector<256x768xbf16>
    %cst = arith.constant dense<0.000000e+00> : vector<16x768xf32>
    %5 = tpu.matmul %3, %4, %cst {dimension_numbers = #tpu.dot_dimension_numbers<[1], [0], [0], [1], [0, 0, 1, 1], [], []>} : vector<16x256xbf16>, vector<256x768xbf16>, vector<16x768xf32> -> vector<16x768xf32>
    %6 = vector.extract_strided_slice %5 {offsets = [0, 0], sizes = [16, 256], strides = [1, 1]} : vector<16x768xf32> to vector<16x256xf32>
    %7 = vector.extract_strided_slice %5 {offsets = [0, 256], sizes = [16, 256], strides = [1, 1]} : vector<16x768xf32> to vector<16x256xf32>
    %8 = vector.extract_strided_slice %5 {offsets = [0, 512], sizes = [16, 256], strides = [1, 1]} : vector<16x768xf32> to vector<16x256xf32>
    %9 = arith.negf %7 : vector<16x256xf32>
    %10 = math.exp %9 : vector<16x256xf32>
    %cst_4 = arith.constant 1.000000e+00 : f32
    %11 = vector.broadcast %cst_4 : f32 to vector<16x256xf32>
    %12 = arith.addf %11, %10 : vector<16x256xf32>
    %13 = arith.divf %11, %12 : vector<16x256xf32>
    %cst_5 = arith.constant 1.000000e+00 : f32
    %14 = vector.broadcast %cst_5 : f32 to vector<16x256xf32>
    %15 = arith.mulf %14, %13 : vector<16x256xf32>
    %cst_6 = arith.constant 0.000000e+00 : f32
    %16 = vector.broadcast %cst_6 : f32 to vector<16x256xf32>
    %17 = arith.addf %16, %15 : vector<16x256xf32>
    %c0_7 = arith.constant 0 : index
    %c0_8 = arith.constant 0 : index
    %18 = vector.load %arg7[%c0_7, %c0_8] : memref<16x256xf32, #tpu.memory_space<vmem>>, vector<16x256xf32>
    tpu.vector_store %arg7[%c0_7, %c0_8], %17 {strides = array<i32>} : memref<16x256xf32, #tpu.memory_space<vmem>>, vector<16x256xf32>,
    %cst_9 = arith.constant 1.000000e+00 : f32
    %19 = vector.broadcast %cst_9 : f32 to vector<16x256xf32>
    %20 = arith.subf %19, %17 : vector<16x256xf32>
    %21 = arith.negf %6 : vector<16x256xf32>
    %22 = math.exp %21 : vector<16x256xf32>
    %cst_10 = arith.constant 1.000000e+00 : f32
    %23 = vector.broadcast %cst_10 : f32 to vector<16x256xf32>
    %24 = arith.addf %23, %22 : vector<16x256xf32>
    %25 = arith.divf %23, %24 : vector<16x256xf32>
    %26 = arith.mulf %6, %25 : vector<16x256xf32>
    %27 = arith.mulf %20, %26 : vector<16x256xf32>
    %c0_11 = arith.constant 0 : index
    %c0_12 = arith.constant 0 : index
    %28 = vector.load %arg8[%c0_11, %c0_12] : memref<16x256xf32, #tpu.memory_space<vmem>>, vector<16x256xf32>
    tpu.vector_store %arg8[%c0_11, %c0_12], %27 {strides = array<i32>} : memref<16x256xf32, #tpu.memory_space<vmem>>, vector<16x256xf32>,
    %29 = arith.negf %8 : vector<16x256xf32>
    %30 = math.exp %29 : vector<16x256xf32>
    %cst_13 = arith.constant 1.000000e+00 : f32
    %31 = vector.broadcast %cst_13 : f32 to vector<16x256xf32>
    %32 = arith.addf %31, %30 : vector<16x256xf32>
    %33 = arith.divf %31, %32 : vector<16x256xf32>
    %c0_14 = arith.constant 0 : index
    %c0_15 = arith.constant 0 : index
    %34 = vector.load %arg9[%c0_14, %c0_15] : memref<16x256xf32, #tpu.memory_space<vmem>>, vector<16x256xf32>
    tpu.vector_store %arg9[%c0_14, %c0_15], %33 {strides = array<i32>} : memref<16x256xf32, #tpu.memory_space<vmem>>, vector<16x256xf32>,
    %c0_16 = arith.constant 0 : index
    %c0_17 = arith.constant 0 : index
    %35 = vector.load %arg10[%c0_16, %c0_17] : memref<2x256xf32, #tpu.memory_space<vmem>>, vector<2x256xf32>
    %c0_i32_18 = arith.constant 0 : i32
    %c8_i32 = arith.constant 8 : i32
    %36 = arith.muli %c0_i32_18, %c8_i32 : i32
    %37 = tpu.assume_multiple %36, 8 : i32
    %38 = arith.index_cast %37 : i32 to index
    %c0_19 = arith.constant 0 : index
    %39 = vector.load %arg7[%38, %c0_19] : memref<16x256xf32, #tpu.memory_space<vmem>>, vector<8x256xf32>
    %40 = arith.index_cast %37 : i32 to index
    %c0_20 = arith.constant 0 : index
    %41 = vector.load %arg8[%40, %c0_20] : memref<16x256xf32, #tpu.memory_space<vmem>>, vector<8x256xf32>
    %42 = arith.index_cast %37 : i32 to index
    %c0_21 = arith.constant 0 : index
    %43 = vector.load %arg9[%42, %c0_21] : memref<16x256xf32, #tpu.memory_space<vmem>>, vector<8x256xf32>
    %44 = vector.extract_strided_slice %39 {offsets = [0, 0], sizes = [2, 256], strides = [1, 1]} : vector<8x256xf32> to vector<2x256xf32>
    %45 = arith.mulf %44, %35 : vector<2x256xf32>
    %46 = vector.extract_strided_slice %41 {offsets = [0, 0], sizes = [2, 256], strides = [1, 1]} : vector<8x256xf32> to vector<2x256xf32>
    %47 = arith.addf %45, %46 : vector<2x256xf32>
    %48 = vector.extract_strided_slice %43 {offsets = [0, 0], sizes = [2, 256], strides = [1, 1]} : vector<8x256xf32> to vector<2x256xf32>
    %49 = arith.mulf %48, %47 : vector<2x256xf32>
    %50 = vector.extract_strided_slice %39 {offsets = [2, 0], sizes = [2, 256], strides = [1, 1]} : vector<8x256xf32> to vector<2x256xf32>
    %51 = arith.mulf %50, %47 : vector<2x256xf32>
    %52 = vector.extract_strided_slice %41 {offsets = [2, 0], sizes = [2, 256], strides = [1, 1]} : vector<8x256xf32> to vector<2x256xf32>
    %53 = arith.addf %51, %52 : vector<2x256xf32>
    %54 = vector.extract_strided_slice %43 {offsets = [2, 0], sizes = [2, 256], strides = [1, 1]} : vector<8x256xf32> to vector<2x256xf32>
    %55 = arith.mulf %54, %53 : vector<2x256xf32>
    %56 = vector.extract_strided_slice %39 {offsets = [4, 0], sizes = [2, 256], strides = [1, 1]} : vector<8x256xf32> to vector<2x256xf32>
    %57 = arith.mulf %56, %53 : vector<2x256xf32>
    %58 = vector.extract_strided_slice %41 {offsets = [4, 0], sizes = [2, 256], strides = [1, 1]} : vector<8x256xf32> to vector<2x256xf32>
    %59 = arith.addf %57, %58 : vector<2x256xf32>
    %60 = vector.extract_strided_slice %43 {offsets = [4, 0], sizes = [2, 256], strides = [1, 1]} : vector<8x256xf32> to vector<2x256xf32>
    %61 = arith.mulf %60, %59 : vector<2x256xf32>
    %62 = vector.extract_strided_slice %39 {offsets = [6, 0], sizes = [2, 256], strides = [1, 1]} : vector<8x256xf32> to vector<2x256xf32>
    %63 = arith.mulf %62, %59 : vector<2x256xf32>
    %64 = vector.extract_strided_slice %41 {offsets = [6, 0], sizes = [2, 256], strides = [1, 1]} : vector<8x256xf32> to vector<2x256xf32>
    %65 = arith.addf %63, %64 : vector<2x256xf32>
    %66 = vector.extract_strided_slice %43 {offsets = [6, 0], sizes = [2, 256], strides = [1, 1]} : vector<8x256xf32> to vector<2x256xf32>
    %67 = arith.mulf %66, %65 : vector<2x256xf32>
    %68 = tpu.concatenate %49, %55, %61, %67 in 0 : vector<2x256xf32>, vector<2x256xf32>, vector<2x256xf32>, vector<2x256xf32> -> vector<8x256xf32>
    %69 = arith.index_cast %37 : i32 to index
    %c0_22 = arith.constant 0 : index
    %70 = vector.load %arg9[%69, %c0_22] : memref<16x256xf32, #tpu.memory_space<vmem>>, vector<8x256xf32>
    tpu.vector_store %arg9[%69, %c0_22], %68 {strides = array<i32>} : memref<16x256xf32, #tpu.memory_space<vmem>>, vector<8x256xf32>,
    %c1_i32 = arith.constant 1 : i32
    %c8_i32_23 = arith.constant 8 : i32
    %71 = arith.muli %c1_i32, %c8_i32_23 : i32
    %72 = tpu.assume_multiple %71, 8 : i32
    %73 = arith.index_cast %72 : i32 to index
    %c0_24 = arith.constant 0 : index
    %74 = vector.load %arg7[%73, %c0_24] : memref<16x256xf32, #tpu.memory_space<vmem>>, vector<8x256xf32>
    %75 = arith.index_cast %72 : i32 to index
    %c0_25 = arith.constant 0 : index
    %76 = vector.load %arg8[%75, %c0_25] : memref<16x256xf32, #tpu.memory_space<vmem>>, vector<8x256xf32>
    %77 = arith.index_cast %72 : i32 to index
    %c0_26 = arith.constant 0 : index
    %78 = vector.load %arg9[%77, %c0_26] : memref<16x256xf32, #tpu.memory_space<vmem>>, vector<8x256xf32>
    %79 = vector.extract_strided_slice %74 {offsets = [0, 0], sizes = [2, 256], strides = [1, 1]} : vector<8x256xf32> to vector<2x256xf32>
    %80 = arith.mulf %79, %65 : vector<2x256xf32>
    %81 = vector.extract_strided_slice %76 {offsets = [0, 0], sizes = [2, 256], strides = [1, 1]} : vector<8x256xf32> to vector<2x256xf32>
    %82 = arith.addf %80, %81 : vector<2x256xf32>
    %83 = vector.extract_strided_slice %78 {offsets = [0, 0], sizes = [2, 256], strides = [1, 1]} : vector<8x256xf32> to vector<2x256xf32>
    %84 = arith.mulf %83, %82 : vector<2x256xf32>
    %85 = vector.extract_strided_slice %74 {offsets = [2, 0], sizes = [2, 256], strides = [1, 1]} : vector<8x256xf32> to vector<2x256xf32>
    %86 = arith.mulf %85, %82 : vector<2x256xf32>
    %87 = vector.extract_strided_slice %76 {offsets = [2, 0], sizes = [2, 256], strides = [1, 1]} : vector<8x256xf32> to vector<2x256xf32>
    %88 = arith.addf %86, %87 : vector<2x256xf32>
    %89 = vector.extract_strided_slice %78 {offsets = [2, 0], sizes = [2, 256], strides = [1, 1]} : vector<8x256xf32> to vector<2x256xf32>
    %90 = arith.mulf %89, %88 : vector<2x256xf32>
    %91 = vector.extract_strided_slice %74 {offsets = [4, 0], sizes = [2, 256], strides = [1, 1]} : vector<8x256xf32> to vector<2x256xf32>
    %92 = arith.mulf %91, %88 : vector<2x256xf32>
    %93 = vector.extract_strided_slice %76 {offsets = [4, 0], sizes = [2, 256], strides = [1, 1]} : vector<8x256xf32> to vector<2x256xf32>
    %94 = arith.addf %92, %93 : vector<2x256xf32>
    %95 = vector.extract_strided_slice %78 {offsets = [4, 0], sizes = [2, 256], strides = [1, 1]} : vector<8x256xf32> to vector<2x256xf32>
    %96 = arith.mulf %95, %94 : vector<2x256xf32>
    %97 = vector.extract_strided_slice %74 {offsets = [6, 0], sizes = [2, 256], strides = [1, 1]} : vector<8x256xf32> to vector<2x256xf32>
    %98 = arith.mulf %97, %94 : vector<2x256xf32>
    %99 = vector.extract_strided_slice %76 {offsets = [6, 0], sizes = [2, 256], strides = [1, 1]} : vector<8x256xf32> to vector<2x256xf32>
    %100 = arith.addf %98, %99 : vector<2x256xf32>
    %101 = vector.extract_strided_slice %78 {offsets = [6, 0], sizes = [2, 256], strides = [1, 1]} : vector<8x256xf32> to vector<2x256xf32>
    %102 = arith.mulf %101, %100 : vector<2x256xf32>
    %103 = tpu.concatenate %84, %90, %96, %102 in 0 : vector<2x256xf32>, vector<2x256xf32>, vector<2x256xf32>, vector<2x256xf32> -> vector<8x256xf32>
    %104 = arith.index_cast %72 : i32 to index
    %c0_27 = arith.constant 0 : index
    %105 = vector.load %arg9[%104, %c0_27] : memref<16x256xf32, #tpu.memory_space<vmem>>, vector<8x256xf32>
    tpu.vector_store %arg9[%104, %c0_27], %103 {strides = array<i32>} : memref<16x256xf32, #tpu.memory_space<vmem>>, vector<8x256xf32>,
    %c2_i32 = arith.constant 2 : i32
    %c0_28 = arith.constant 0 : index
    %c0_29 = arith.constant 0 : index
    %106 = vector.load %arg10[%c0_28, %c0_29] : memref<2x256xf32, #tpu.memory_space<vmem>>, vector<2x256xf32>
    tpu.vector_store %arg10[%c0_28, %c0_29], %100 {strides = array<i32>} : memref<2x256xf32, #tpu.memory_space<vmem>>, vector<2x256xf32>,
    %c0_30 = arith.constant 0 : index
    %c0_31 = arith.constant 0 : index
    %107 = vector.load %arg6[%c0_30, %c0_31] : memref<2x256xf32, #tpu.memory_space<vmem>>, vector<2x256xf32>
    tpu.vector_store %arg6[%c0_30, %c0_31], %100 {strides = array<i32>} : memref<2x256xf32, #tpu.memory_space<vmem>>, vector<2x256xf32>,
    %c0_32 = arith.constant 0 : index
    %c0_33 = arith.constant 0 : index
    %108 = vector.load %arg9[%c0_32, %c0_33] : memref<16x256xf32, #tpu.memory_space<vmem>>, vector<16x256xf32>
    %109 = arith.truncf %108 : vector<16x256xf32> to vector<16x256xbf16>
    %c0_34 = arith.constant 0 : index
    %c0_35 = arith.constant 0 : index
    %110 = vector.load %arg4[%c0_34, %c0_35] : memref<256x256xbf16, #tpu.memory_space<vmem>>, vector<256x256xbf16>
    %cst_36 = arith.constant dense<0.000000e+00> : vector<16x256xf32>
    %111 = tpu.matmul %109, %110, %cst_36 {dimension_numbers = #tpu.dot_dimension_numbers<[1], [0], [0], [1], [0, 0, 1, 1], [], []>} : vector<16x256xbf16>, vector<256x256xbf16>, vector<16x256xf32> -> vector<16x256xf32>
    %112 = arith.extf %3 : vector<16x256xbf16> to vector<16x256xf32>
    %113 = arith.addf %112, %111 : vector<16x256xf32>
    %114 = arith.truncf %113 : vector<16x256xf32> to vector<16x256xbf16>
    %c0_37 = arith.constant 0 : index
    %c0_38 = arith.constant 0 : index
    %115 = vector.load %arg5[%c0_37, %c0_38] : memref<16x256xbf16, #tpu.memory_space<vmem>>, vector<16x256xbf16>
    tpu.vector_store %arg5[%c0_37, %c0_38], %114 {strides = array<i32>} : memref<16x256xbf16, #tpu.memory_space<vmem>>, vector<16x256xbf16>,
    return
  }
  func.func @transform_0(%arg0: i32) -> (i32, i32) {
    %c0_i32 = arith.constant 0 : i32
    %c0_i32_0 = arith.constant 0 : i32
    return %arg0, %c0_i32 : i32, i32
  }
  func.func @transform_1(%arg0: i32) -> (i32, i32) {
    %c0_i32 = arith.constant 0 : i32
    %c0_i32_0 = arith.constant 0 : i32
    %c0_i32_1 = arith.constant 0 : i32
    return %c0_i32, %c0_i32_0 : i32, i32
  }
  func.func @transform_2(%arg0: i32) -> (i32, i32) {
    %c0_i32 = arith.constant 0 : i32
    %c0_i32_0 = arith.constant 0 : i32
    %c0_i32_1 = arith.constant 0 : i32
    return %c0_i32, %c0_i32_0 : i32, i32
  }
  func.func @transform_3(%arg0: i32) -> (i32, i32) {
    %c0_i32 = arith.constant 0 : i32
    %c0_i32_0 = arith.constant 0 : i32
    %c0_i32_1 = arith.constant 0 : i32
    return %c0_i32, %c0_i32_0 : i32, i32
  }
  func.func @transform_4(%arg0: i32) -> (i32, i32) {
    %c0_i32 = arith.constant 0 : i32
    %c0_i32_0 = arith.constant 0 : i32
    return %arg0, %c0_i32 : i32, i32
  }
  func.func @transform_5(%arg0: i32) -> (i32, i32) {
    %c0_i32 = arith.constant 0 : i32
    %c0_i32_0 = arith.constant 0 : i32
    %c0_i32_1 = arith.constant 0 : i32
    return %c0_i32, %c0_i32_0 : i32, i32
  }
}

</mosaic_0001>

<bundles_post_ra>
// kernel: tpu_custom_call.1
= control target key start
LH: loop header
LB: loop body
LE: loop exit
PB: predicated region body
PF: predicated region fallthrough
CT: control target
= control target key end

     0   :  { %11 = vsyncpa [#allocation7], 0  ;;  %s2112_s0 = inlined_call_operand.hbm [shape: bf16[16,256], index: 0, kind: input, shape index: {}]   ;;  %s2113_s1 = inlined_call_operand.hbm [shape: f32[2,256], index: 1, kind: input, shape index: {}]   ;;  %s2114_s2 = inlined_call_operand.hbm [shape: bf16[256,768], index: 2, kind: input, shape index: {}]   ;;  %s2115_s3 = inlined_call_operand.hbm [shape: bf16[256,256], index: 3, kind: input, shape index: {}]   ;;  %s2116_s4 = inlined_call_operand.hbm [shape: bf16[16,256], index: 4, kind: output, shape index: {0}]   ;;  %s2117_s5 = inlined_call_operand.hbm [shape: f32[2,256], index: 5, kind: output, shape index: {1}]  }
   0x1   :  { %12 = vsyncpa [#allocation10], 0 }
   0x2   :  { %13 = vsyncpa [#allocation13], 0 }
   0x3   :  { %14 = vsyncpa [#allocation8], 0 }
   0x4   :  { %15 = vsyncpa [#allocation16], 0  ;;  %s1899_s18 = smov [#allocation9]   ;;  %s1900_s20 = smov [#allocation6]  }
   0x5   :  { %s34_s19 = sshll.u32 %s1899_s18, 4  ;;  %s21_s21 = sshll.u32 %s1900_s20, 4  ;;  %s35_s19 = int_to_ptr.vmem [resolvable:$true] %s34_s19  ;;  %s1940_s21 = int_to_ptr.vmem [resolvable:$true] %s21_s21 }
   0x6   :  { %s1757_s24 = scalar_lea.hbm %s2113_s1, 64 }
   0x7   :  { %p1758_p0 = scmp.ne.s32.totalorder %s2113_s1, %s1757_s24  ;;  %p1761_p1 = scmp.lt.u32.totalorder %s1757_s24, %s2113_s1 }
   0x9   :  { %p1763_p2 = pnand %p1761_p1, %p1758_p0 }
   0xb   :  { %1766 = shalt.err (!%p1763_p2)
}
   0xc   :  { %s1767_s29 = scalar_lea.vmem %s35_s19, 64  ;;  %p1772_p4 = scmp.lt.s32.totalorder %s35_s19, %s35_s19 }
   0xd   :  { %p1768_p3 = scmp.ne.s32.totalorder %s35_s19, %s1767_s29  ;;  %p1773_p5 = scmp.lt.s32.totalorder %s1767_s29, %s1767_s29 }
   0xf   :  { %p1774_p6 = por %p1773_p5, %p1772_p4 }
  0x11   :  { %p1775_p7 = pnand %p1774_p6, %p1768_p3 }
  0x13   :  { %1778 = shalt.err (!%p1775_p7)
}
  0x14   :  { %37 = dma.hbm_to_vmem [thread:$0]  %s2113_s1, 64, %s35_s19, [#allocation10]  }
  0x15   :  { %s1779_s9 = scalar_lea.hbm %s2112_s0, 256 }
  0x16   :  { %p1780_p8 = scmp.ne.s32.totalorder %s2112_s0, %s1779_s9  ;;  %p1783_p9 = scmp.lt.u32.totalorder %s1779_s9, %s2112_s0 }
  0x18   :  { %p1785_p10 = pnand %p1783_p9, %p1780_p8 }
  0x1a   :  { %1788 = shalt.err (!%p1785_p10)
}
  0x1b   :  { %s1789_s14 = scalar_lea.vmem %s1940_s21, 256  ;;  %p1794_p12 = scmp.lt.s32.totalorder %s1940_s21, %s1940_s21 }
  0x1c   :  { %p1790_p11 = scmp.ne.s32.totalorder %s1940_s21, %s1789_s14  ;;  %p1795_p13 = scmp.lt.s32.totalorder %s1789_s14, %s1789_s14 }
  0x1e   :  { %p1796_p0 = por %p1795_p13, %p1794_p12 }
  0x20   :  { %p1797_p1 = pnand %p1796_p0, %p1790_p11 }
  0x22   :  { %1800 = shalt.err (!%p1797_p1)
}
  0x23   :  { %s1901_s1 = smov 128   ;;  %s1902_s15 = smov 8  }
  0x24   :  { %27 = dma.hbm_to_vmem [thread:$0]  %s2112_s0, 256, %s1940_s21, [#allocation7], %s1901_s1, %s1901_s1, %s1902_s15  }
  0x25   :  { %s1903_s18 = smov [#allocation11]   ;;  %s1801_s23 = scalar_lea.hbm %s2114_s2, 12288 }
  0x26   :  { %s43_s19 = sshll.u32 %s1903_s18, 4  ;;  %p1802_p2 = scmp.ne.s32.totalorder %s2114_s2, %s1801_s23  ;;  %s44_s19 = int_to_ptr.vmem [resolvable:$true] %s43_s19 }
  0x27   :  { %p1805_p3 = scmp.lt.u32.totalorder %s1801_s23, %s2114_s2 }
  0x29   :  { %p1807_p4 = pnand %p1805_p3, %p1802_p2 }
  0x2b   :  { %1810 = shalt.err (!%p1807_p4)
}
  0x2c   :  { %s1811_s28 = scalar_lea.vmem %s44_s19, 12288  ;;  %p1816_p6 = scmp.lt.s32.totalorder %s44_s19, %s44_s19 }
  0x2d   :  { %p1812_p5 = scmp.ne.s32.totalorder %s44_s19, %s1811_s28  ;;  %p1817_p7 = scmp.lt.s32.totalorder %s1811_s28, %s1811_s28 }
  0x2f   :  { %p1818_p8 = por %p1817_p7, %p1816_p6 }
  0x31   :  { %p1819_p9 = pnand %p1818_p8, %p1812_p5 }
  0x33   :  { %1822 = shalt.err (!%p1819_p9)
}
  0x34   :  { %s1904_s0 = smov 384   ;;  %s1905_s21 = smov 24  }
  0x35   :  { %49 = dma.hbm_to_vmem [thread:$0]  %s2114_s2, 12288, %s44_s19, [#allocation10], %s1904_s0, %s1904_s0, %s1905_s21  }
  0x36   :  { %s1906_s6 = smov [#allocation12]   ;;  %s1823_s10 = scalar_lea.hbm %s2115_s3, 4096 }
  0x37   :  { %s55_s7 = sshll.u32 %s1906_s6, 4  ;;  %p1824_p10 = scmp.ne.s32.totalorder %s2115_s3, %s1823_s10  ;;  %s56_s7 = int_to_ptr.vmem [resolvable:$true] %s55_s7 }
  0x38   :  { %p1827_p11 = scmp.lt.u32.totalorder %s1823_s10, %s2115_s3 }
  0x3a   :  { %p1829_p12 = pnand %p1827_p11, %p1824_p10 }
  0x3c   :  { %1832 = shalt.err (!%p1829_p12)
}
  0x3d   :  { %s1833_s16 = scalar_lea.vmem %s56_s7, 4096  ;;  %p1838_p0 = scmp.lt.s32.totalorder %s56_s7, %s56_s7 }
  0x3e   :  { %p1834_p13 = scmp.ne.s32.totalorder %s56_s7, %s1833_s16  ;;  %p1839_p1 = scmp.lt.s32.totalorder %s1833_s16, %s1833_s16 }
  0x40   :  { %p1840_p2 = por %p1839_p1, %p1838_p0 }
  0x42   :  { %p1841_p3 = pnand %p1840_p2, %p1834_p13 }
  0x44   :  { %1844 = shalt.err (!%p1841_p3)
}
  0x45   :  { %61 = dma.hbm_to_vmem [thread:$0]  %s2115_s3, 4096, %s56_s7, [#allocation13], %s1901_s1, %s1901_s1, %s1902_s15  }
  0x46   :  { %1889 = dma.done.wait [#allocation7], 256  }
  0x47   :  { %1890 = vsyncadd [#allocation7], 4294967040 }
  0x48   :  { %1891 = dma.done.wait [#allocation10], 12352  }
  0x49   :  { %1892 = vsyncadd [#allocation10], 4294954944 }
  0x4a   :  { %1893 = dma.done.wait [#allocation13], 4096  }
  0x4b   :  { %1894 = vsyncadd [#allocation13], 4294963200  ;;  %v1515_v0 = vld [vmem:[#allocation11 + $0x4] ss:$24 sps:$4 sm:$0xff]   ;;  %v1519_v2 = vld [vmem:[#allocation11] ss:$24 sps:$4 sm:$0xff]  }
  0x4c   :  { %v1517_v1 = vld [vmem:[#allocation11 + $0xc] ss:$24 sps:$4 sm:$0xff]   ;;  %668 = vmatprep.subr.bf16.mxu0 %v1515_v0  ;;  %v1520_v3 = vld [vmem:[#allocation11 + $0x8] ss:$24 sps:$4 sm:$0xff]   ;;  %v1523_v5 = vld [vmem:[#allocation11 + $0x3c] ss:$24 sps:$4 sm:$0xff]  }
  0x4d   :  { %711 = vmatprep.subr.bf16.mxu1 %v1517_v1  ;;  %v1521_v4 = vld [vmem:[#allocation11 + $0x34] ss:$24 sps:$4 sm:$0xff]   ;;  %669 = vmatpush1.bf16.msra.mxu0 %v1519_v2  ;;  %v1525_v6 = vld [vmem:[#allocation11 + $0x30] ss:$24 sps:$4 sm:$0xff]   ;;  %v1527_v8 = vld [vmem:[#allocation11 + $0x64] ss:$24 sps:$4 sm:$0xff]  }
  0x4e   :  { %712 = vmatpush1.bf16.msra.mxu1 %v1520_v3  ;;  %670 = vmatprep.subr.bf16.mxu0 %v1521_v4  ;;  %v1526_v7 = vld [vmem:[#allocation11 + $0x38] ss:$24 sps:$4 sm:$0xff]   ;;  %v1529_v9 = vld [vmem:[#allocation11 + $0x6c] ss:$24 sps:$4 sm:$0xff]   ;;  %v1532_v11 = vld [vmem:[#allocation11 + $0x68] ss:$24 sps:$4 sm:$0xff]  }
  0x4f   :  { %713 = vmatprep.subr.bf16.mxu1 %v1523_v5  ;;  %v1531_v10 = vld [vmem:[#allocation11 + $0x60] ss:$24 sps:$4 sm:$0xff]   ;;  %v1533_v12 = vld [vmem:[#allocation11 + $0x94] ss:$24 sps:$4 sm:$0xff]   ;;  %v1537_v14 = vld [vmem:[#allocation11 + $0x90] ss:$24 sps:$4 sm:$0xff]  }
  0x50   :  { %v1535_v13 = vld [vmem:[#allocation11 + $0x9c] ss:$24 sps:$4 sm:$0xff]   ;;  %v1538_v15 = vld [vmem:[#allocation11 + $0x98] ss:$24 sps:$4 sm:$0xff]   ;;  %v1541_v17 = vld [vmem:[#allocation11 + $0xcc] ss:$24 sps:$4 sm:$0xff]  }
  0x51   :  { %671 = vmatpush1.bf16.msra.mxu0 %v1525_v6  ;;  %v1539_v16 = vld [vmem:[#allocation11 + $0xc4] ss:$24 sps:$4 sm:$0xff]   ;;  %v1543_v18 = vld [vmem:[#allocation11 + $0xc0] ss:$24 sps:$4 sm:$0xff]   ;;  %v1545_v20 = vld [vmem:[#allocation11 + $0xf4] ss:$24 sps:$4 sm:$0xff]  }
  0x52   :  { %714 = vmatpush1.bf16.msra.mxu1 %v1526_v7  ;;  %672 = vmatprep.subr.bf16.mxu0 %v1527_v8  ;;  %v1544_v19 = vld [vmem:[#allocation11 + $0xc8] ss:$24 sps:$4 sm:$0xff]   ;;  %v1547_v21 = vld [vmem:[#allocation11 + $0xfc] ss:$24 sps:$4 sm:$0xff]   ;;  %v1550_v23 = vld [vmem:[#allocation11 + $0xf8] ss:$24 sps:$4 sm:$0xff]  }
  0x53   :  { %715 = vmatprep.subr.bf16.mxu1 %v1529_v9  ;;  %v1549_v22 = vld [vmem:[#allocation11 + $0xf0] ss:$24 sps:$4 sm:$0xff]   ;;  %v1551_v24 = vld [vmem:[#allocation11 + $0x124] ss:$24 sps:$4 sm:$0xff]   ;;  %v1555_v26 = vld [vmem:[#allocation11 + $0x120] ss:$24 sps:$4 sm:$0xff]  }
  0x54   :  { %v1553_v25 = vld [vmem:[#allocation11 + $0x12c] ss:$24 sps:$4 sm:$0xff]   ;;  %v1556_v27 = vld [vmem:[#allocation11 + $0x128] ss:$24 sps:$4 sm:$0xff]   ;;  %v1559_v29 = vld [vmem:[#allocation11 + $0x15c] ss:$24 sps:$4 sm:$0xff]  }
  0x55   :  { %673 = vmatpush1.bf16.msra.mxu0 %v1531_v10  ;;  %v1557_v28 = vld [vmem:[#allocation11 + $0x154] ss:$24 sps:$4 sm:$0xff]   ;;  %v1561_v30 = vld [vmem:[#allocation11 + $0x150] ss:$24 sps:$4 sm:$0xff]   ;;  %v1563_v32 = vld [vmem:[#allocation11 + $0x184] ss:$24 sps:$4 sm:$0xff]  }
  0x56   :  { %716 = vmatpush1.bf16.msra.mxu1 %v1532_v11  ;;  %674 = vmatprep.subr.bf16.mxu0 %v1533_v12  ;;  %v1562_v31 = vld [vmem:[#allocation11 + $0x158] ss:$24 sps:$4 sm:$0xff]   ;;  %v1565_v33 = vld [vmem:[#allocation11 + $0x18c] ss:$24 sps:$4 sm:$0xff]   ;;  %v1568_v35 = vld [vmem:[#allocation11 + $0x188] ss:$24 sps:$4 sm:$0xff]  }
  0x57   :  { %717 = vmatprep.subr.bf16.mxu1 %v1535_v13  ;;  %v1567_v34 = vld [vmem:[#allocation11 + $0x180] ss:$24 sps:$4 sm:$0xff]   ;;  %v1569_v36 = vld [vmem:[#allocation11 + $0x1b4] ss:$24 sps:$4 sm:$0xff]   ;;  %v1573_v38 = vld [vmem:[#allocation11 + $0x1b0] ss:$24 sps:$4 sm:$0xff]  }
  0x58   :  { %v1571_v37 = vld [vmem:[#allocation11 + $0x1bc] ss:$24 sps:$4 sm:$0xff]   ;;  %v1574_v39 = vld [vmem:[#allocation11 + $0x1b8] ss:$24 sps:$4 sm:$0xff]   ;;  %v1577_v41 = vld [vmem:[#allocation11 + $0x1ec] ss:$24 sps:$4 sm:$0xff]  }
  0x59   :  { %675 = vmatpush1.bf16.msra.mxu0 %v1537_v14  ;;  %v1575_v40 = vld [vmem:[#allocation11 + $0x1e4] ss:$24 sps:$4 sm:$0xff]   ;;  %v1579_v42 = vld [vmem:[#allocation11 + $0x1e0] ss:$24 sps:$4 sm:$0xff]   ;;  %v1581_v44 = vld [vmem:[#allocation11 + $0x214] ss:$24 sps:$4 sm:$0xff]  }
  0x5a   :  { %718 = vmatpush1.bf16.msra.mxu1 %v1538_v15  ;;  %676 = vmatprep.subr.bf16.mxu0 %v1539_v16  ;;  %v1580_v43 = vld [vmem:[#allocation11 + $0x1e8] ss:$24 sps:$4 sm:$0xff]   ;;  %v1583_v45 = vld [vmem:[#allocation11 + $0x21c] ss:$24 sps:$4 sm:$0xff]   ;;  %v2001_v46 = vld [vmem:[#allocation6] sm:$0xff]  ;;  %vm964_vm0 = vcmask 1041408  }
  0x5b   :  { %719 = vmatprep.subr.bf16.mxu1 %v1541_v17  ;;  %v2003_v47 = vld [vmem:[#allocation6 + $0x8] sm:$0xff]  ;;  %v1585_v48 = vld [vmem:[#allocation11 + $0x210] ss:$24 sps:$4 sm:$0xff]   ;;  %v1587_v51 = vld [vmem:[#allocation11 + $0x244] ss:$24 sps:$4 sm:$0xff]   ;;  %vm967_vm1 = vcmask 1043456  }
  0x5c   :  { %v1586_v49 = vld [vmem:[#allocation11 + $0x218] ss:$24 sps:$4 sm:$0xff]   ;;  %v1358_v50 = vcombine.high %v2001_v46, %v2003_v47  ;;  %v1589_v52 = vld [vmem:[#allocation11 + $0x24c] ss:$24 sps:$4 sm:$0xff]   ;;  %v1592_v54 = vld [vmem:[#allocation11 + $0x248] ss:$24 sps:$4 sm:$0xff]   ;;  %v2009_v4 = vcombine.low %v2001_v46, %v2003_v47 }
  0x5d   :  { %677 = vmatpush1.bf16.msra.mxu0 %v1543_v18  ;;  %v1591_v53 = vld [vmem:[#allocation11 + $0x240] ss:$24 sps:$4 sm:$0xff]   ;;  %v1593_v55 = vld [vmem:[#allocation11 + $0x274] ss:$24 sps:$4 sm:$0xff]   ;;  %v1597_v57 = vld [vmem:[#allocation11 + $0x270] ss:$24 sps:$4 sm:$0xff]  }
  0x5e   :  { %720 = vmatpush1.bf16.msra.mxu1 %v1544_v19  ;;  %678 = vmatprep.subr.bf16.mxu0 %v1545_v20  ;;  %v1595_v56 = vld [vmem:[#allocation11 + $0x27c] ss:$24 sps:$4 sm:$0xff]   ;;  %v1598_v58 = vld [vmem:[#allocation11 + $0x278] ss:$24 sps:$4 sm:$0xff]   ;;  %v1601_v60 = vld [vmem:[#allocation11 + $0x2ac] ss:$24 sps:$4 sm:$0xff]  }
  0x5f   :  { %721 = vmatprep.subr.bf16.mxu1 %v1547_v21  ;;  %700 = vmatprep.mubr.bf16.mxu0 %v1358_v50  ;;  %v1599_v59 = vld [vmem:[#allocation11 + $0x2a4] ss:$24 sps:$4 sm:$0xff]   ;;  %v1603_v61 = vld [vmem:[#allocation11 + $0x2a0] ss:$24 sps:$4 sm:$0xff]   ;;  %v1605_v63 = vld [vmem:[#allocation11 + $0x2d4] ss:$24 sps:$4 sm:$0xff]  }
  0x60   :  { %743 = vmatprep.mubr.bf16.mxu1 %v1358_v50  ;;  %v1604_v62 = vld [vmem:[#allocation11 + $0x2a8] ss:$24 sps:$4 sm:$0xff]   ;;  %v1607_v0 = vld [vmem:[#allocation11 + $0x2dc] ss:$24 sps:$4 sm:$0xff]   ;;  %v1610_v2 = vld [vmem:[#allocation11 + $0x2d8] ss:$24 sps:$4 sm:$0xff]  }
  0x61   :  { %679 = vmatpush1.bf16.msra.mxu0 %v1549_v22  ;;  %v1609_v1 = vld [vmem:[#allocation11 + $0x2d0] ss:$24 sps:$4 sm:$0xff]   ;;  %v1615_v3 = vld [vmem:[#allocation11 + $0x14] ss:$24 sps:$4 sm:$0xff]   ;;  %v1618_v6 = vld [vmem:[#allocation11 + $0x44] ss:$24 sps:$4 sm:$0xff]  }
  0x62   :  { %722 = vmatpush1.bf16.msra.mxu1 %v1550_v23  ;;  %680 = vmatprep.subr.bf16.mxu0 %v1551_v24  ;;  %v1613_v5 = vld [vmem:[#allocation11 + $0x10] ss:$24 sps:$4 sm:$0xff]   ;;  %v1616_v7 = vld [vmem:[#allocation11 + $0x40] ss:$24 sps:$4 sm:$0xff]   ;;  %v1621_v8 = vld [vmem:[#allocation11 + $0x74] ss:$24 sps:$4 sm:$0xff]  }
  0x63   :  { %723 = vmatprep.subr.bf16.mxu1 %v1553_v25  ;;  %v1619_v9 = vld [vmem:[#allocation11 + $0x70] ss:$24 sps:$4 sm:$0xff]   ;;  %v1624_v10 = vld [vmem:[#allocation11 + $0xa4] ss:$24 sps:$4 sm:$0xff]   ;;  %v1622_v11 = vld [vmem:[#allocation11 + $0xa0] ss:$24 sps:$4 sm:$0xff]  }
  0x64   :  { %v1627_v12 = vld [vmem:[#allocation11 + $0xd4] ss:$24 sps:$4 sm:$0xff]   ;;  %v1625_v13 = vld [vmem:[#allocation11 + $0xd0] ss:$24 sps:$4 sm:$0xff]   ;;  %v1630_v14 = vld [vmem:[#allocation11 + $0x104] ss:$24 sps:$4 sm:$0xff]  }
  0x65   :  { %681 = vmatpush1.bf16.msra.mxu0 %v1555_v26  ;;  %v1628_v15 = vld [vmem:[#allocation11 + $0x100] ss:$24 sps:$4 sm:$0xff]   ;;  %v1633_v16 = vld [vmem:[#allocation11 + $0x134] ss:$24 sps:$4 sm:$0xff]   ;;  %v1631_v17 = vld [vmem:[#allocation11 + $0x130] ss:$24 sps:$4 sm:$0xff]  }
  0x66   :  { %724 = vmatpush1.bf16.msra.mxu1 %v1556_v27  ;;  %682 = vmatprep.subr.bf16.mxu0 %v1557_v28  ;;  %v1636_v18 = vld [vmem:[#allocation11 + $0x164] ss:$24 sps:$4 sm:$0xff]   ;;  %v1634_v19 = vld [vmem:[#allocation11 + $0x160] ss:$24 sps:$4 sm:$0xff]   ;;  %v1639_v20 = vld [vmem:[#allocation11 + $0x194] ss:$24 sps:$4 sm:$0xff]  }
  0x67   :  { %725 = vmatprep.subr.bf16.mxu1 %v1559_v29  ;;  %v1637_v21 = vld [vmem:[#allocation11 + $0x190] ss:$24 sps:$4 sm:$0xff]   ;;  %v1642_v22 = vld [vmem:[#allocation11 + $0x1c4] ss:$24 sps:$4 sm:$0xff]   ;;  %v1640_v23 = vld [vmem:[#allocation11 + $0x1c0] ss:$24 sps:$4 sm:$0xff]  }
  0x68   :  { %v1645_v24 = vld [vmem:[#allocation11 + $0x1f4] ss:$24 sps:$4 sm:$0xff]   ;;  %v1643_v25 = vld [vmem:[#allocation11 + $0x1f0] ss:$24 sps:$4 sm:$0xff]   ;;  %v1648_v26 = vld [vmem:[#allocation11 + $0x224] ss:$24 sps:$4 sm:$0xff]  }
  0x69   :  { %683 = vmatpush1.bf16.msra.mxu0 %v1561_v30  ;;  %v1646_v27 = vld [vmem:[#allocation11 + $0x220] ss:$24 sps:$4 sm:$0xff]   ;;  %v1651_v28 = vld [vmem:[#allocation11 + $0x254] ss:$24 sps:$4 sm:$0xff]   ;;  %v1649_v29 = vld [vmem:[#allocation11 + $0x250] ss:$24 sps:$4 sm:$0xff]  }
  0x6a   :  { %726 = vmatpush1.bf16.msra.mxu1 %v1562_v31  ;;  %684 = vmatprep.subr.bf16.mxu0 %v1563_v32  ;;  %v1654_v30 = vld [vmem:[#allocation11 + $0x284] ss:$24 sps:$4 sm:$0xff]   ;;  %v1652_v31 = vld [vmem:[#allocation11 + $0x280] ss:$24 sps:$4 sm:$0xff]   ;;  %v1657_v32 = vld [vmem:[#allocation11 + $0x2b4] ss:$24 sps:$4 sm:$0xff]  }
  0x6b   :  { %727 = vmatprep.subr.bf16.mxu1 %v1565_v33  ;;  %v1655_v33 = vld [vmem:[#allocation11 + $0x2b0] ss:$24 sps:$4 sm:$0xff]   ;;  %vm970_vm2 = vcmask 1045504   ;;  %s1908_s3 = smov [#allocation15]  }
  0x6c   :  { %s1339_s18 = sshll.u32 %s1908_s3, 4  ;;  %s1340_s18 = int_to_ptr.vmem [resolvable:$true] %s1339_s18 }
  0x6d   :  { %685 = vmatpush1.bf16.msra.mxu0 %v1567_v34  ;;  %v1660_v34 = vld [vmem:[#allocation11 + $0x2e4] ss:$24 sps:$4 sm:$0xff]   ;;  %s1845_s19 = scalar_lea.vmem %s1340_s18, 64  ;;  %p1850_p5 = scmp.lt.s32.totalorder %s1340_s18, %s1340_s18 }
  0x6e   :  { %728 = vmatpush1.bf16.msra.mxu1 %v1568_v35  ;;  %686 = vmatprep.subr.bf16.mxu0 %v1569_v36  ;;  %v1658_v35 = vld [vmem:[#allocation11 + $0x2e0] ss:$24 sps:$4 sm:$0xff]   ;;  %v78_v36 = vld [vmem:[#allocation9] sm:$0xf]  ;;  %p1846_p4 = scmp.ne.s32.totalorder %s1340_s18, %s1845_s19  ;;  %p1851_p6 = scmp.lt.s32.totalorder %s1845_s19, %s1845_s19 }
  0x6f   :  { %729 = vmatprep.subr.bf16.mxu1 %v1571_v37  ;;  %79 = vst [vmem:[#allocation5] sm:$0xf] %v78_v36  ;;  %v1661_v37 = vld [vmem:[#allocation12] ss:$8 sps:$4 sm:$0xff]  }
  0x70   :  { %p1852_p7 = por %p1851_p6, %p1850_p5 }
  0x71   :  { %687 = vmatpush1.bf16.msra.mxu0 %v1573_v38  ;;  %v1663_v38 = vld [vmem:[#allocation12 + $0x4] ss:$8 sps:$4 sm:$0xff]  }
  0x72   :  { %730 = vmatpush1.bf16.msra.mxu1 %v1574_v39  ;;  %688 = vmatprep.subr.bf16.mxu0 %v1575_v40  ;;  %v1666_v39 = vld [vmem:[#allocation12 + $0x14] ss:$8 sps:$4 sm:$0xff]   ;;  %v1664_v40 = vld [vmem:[#allocation12 + $0x10] ss:$8 sps:$4 sm:$0xff]   ;;  %p1853_p8 = pnand %p1852_p7, %p1846_p4 }
  0x73   :  { %731 = vmatprep.subr.bf16.mxu1 %v1577_v41  ;;  %v1669_v41 = vld [vmem:[#allocation12 + $0x24] ss:$8 sps:$4 sm:$0xff]  }
  0x75   :  { %689 = vmatpush1.bf16.msra.mxu0 %v1579_v42  ;;  %v1667_v42 = vld [vmem:[#allocation12 + $0x20] ss:$8 sps:$4 sm:$0xff]  }
  0x76   :  { %732 = vmatpush1.bf16.msra.mxu1 %v1580_v43  ;;  %690 = vmatprep.subr.bf16.mxu0 %v1581_v44  ;;  %v1672_v43 = vld [vmem:[#allocation12 + $0x34] ss:$8 sps:$4 sm:$0xff]   ;;  %v1670_v44 = vld [vmem:[#allocation12 + $0x30] ss:$8 sps:$4 sm:$0xff]  }
  0x77   :  { %733 = vmatprep.subr.bf16.mxu1 %v1583_v45  ;;  %v1675_v45 = vld [vmem:[#allocation12 + $0x44] ss:$8 sps:$4 sm:$0xff]  }
  0x79   :  { %691 = vmatpush1.bf16.msra.mxu0 %v1585_v48  ;;  %v1673_v48 = vld [vmem:[#allocation12 + $0x40] ss:$8 sps:$4 sm:$0xff]  }
  0x7a   :  { %734 = vmatpush1.bf16.msra.mxu1 %v1586_v49  ;;  %692 = vmatprep.subr.bf16.mxu0 %v1587_v51  ;;  %v1678_v49 = vld [vmem:[#allocation12 + $0x54] ss:$8 sps:$4 sm:$0xff]   ;;  %v1681_v51 = vld [vmem:[#allocation12 + $0x64] ss:$8 sps:$4 sm:$0xff]  }
  0x7b   :  { %735 = vmatprep.subr.bf16.mxu1 %v1589_v52  ;;  %v1679_v52 = vld [vmem:[#allocation12 + $0x60] ss:$8 sps:$4 sm:$0xff]  }
  0x7d   :  { %693 = vmatpush1.bf16.msra.mxu0 %v1591_v53  ;;  %v1684_v53 = vld [vmem:[#allocation12 + $0x74] ss:$8 sps:$4 sm:$0xff]  }
  0x7e   :  { %736 = vmatpush1.bf16.msra.mxu1 %v1592_v54  ;;  %694 = vmatprep.subr.bf16.mxu0 %v1593_v55  ;;  %v1682_v54 = vld [vmem:[#allocation12 + $0x70] ss:$8 sps:$4 sm:$0xff]   ;;  %v1687_v55 = vld [vmem:[#allocation12 + $0x84] ss:$8 sps:$4 sm:$0xff]  }
  0x7f   :  { %737 = vmatprep.subr.bf16.mxu1 %v1595_v56  ;;  %v1685_v56 = vld [vmem:[#allocation12 + $0x80] ss:$8 sps:$4 sm:$0xff]  }
  0x81   :  { %695 = vmatpush1.bf16.msra.mxu0 %v1597_v57  ;;  %v1690_v57 = vld [vmem:[#allocation12 + $0x94] ss:$8 sps:$4 sm:$0xff]  }
  0x82   :  { %738 = vmatpush1.bf16.msra.mxu1 %v1598_v58  ;;  %696 = vmatprep.subr.bf16.mxu0 %v1599_v59  ;;  %v1688_v58 = vld [vmem:[#allocation12 + $0x90] ss:$8 sps:$4 sm:$0xff]   ;;  %v1693_v59 = vld [vmem:[#allocation12 + $0xa4] ss:$8 sps:$4 sm:$0xff]  }
  0x83   :  { %739 = vmatprep.subr.bf16.mxu1 %v1601_v60  ;;  %v1691_v60 = vld [vmem:[#allocation12 + $0xa0] ss:$8 sps:$4 sm:$0xff]  }
  0x85   :  { %697 = vmatpush1.bf16.msra.mxu0 %v1603_v61  ;;  %v1694_v61 = vld [vmem:[#allocation12 + $0xb0] ss:$8 sps:$4 sm:$0xff]  }
  0x86   :  { %740 = vmatpush1.bf16.msra.mxu1 %v1604_v62  ;;  %698 = vmatprep.subr.bf16.mxu0 %v1605_v63  ;;  %v1696_v62 = vld [vmem:[#allocation12 + $0xb4] ss:$8 sps:$4 sm:$0xff]   ;;  %v1699_v63 = vld [vmem:[#allocation12 + $0xc4] ss:$8 sps:$4 sm:$0xff]  }
  0x87   :  { %741 = vmatprep.subr.bf16.mxu1 %v1607_v0  ;;  %v1697_v0 = vld [vmem:[#allocation12 + $0xc0] ss:$8 sps:$4 sm:$0xff]  }
  0x89   :  { %699 = vmatpush1.bf16.msra.mxu0 %v1609_v1  ;;  %v1702_v1 = vld [vmem:[#allocation12 + $0xd4] ss:$8 sps:$4 sm:$0xff]  }
  0x8a   :  { %742 = vmatpush1.bf16.msra.mxu1 %v1610_v2  ;;  %754 = vmatprep.subr.bf16.mxu0 %v1615_v3  ;;  %v1700_v2 = vld [vmem:[#allocation12 + $0xd0] ss:$8 sps:$4 sm:$0xff]   ;;  %v1705_v3 = vld [vmem:[#allocation12 + $0xe4] ss:$8 sps:$4 sm:$0xff]  }
  0x8b   :  { %1256 = vmatprep.subr.bf16.mxu1 %v1663_v38 }
  0x8c   :  { %701 = vmatmul.mubr.bf16.vlgmr.msra.gmra.mrb[0].mxu0 %v2009_v4 }
  0x8d   :  { %744 = vmatmul.mubr.bf16.vlgmr.msra.gmra.mrb[0].mxu1 %v2009_v4  ;;  %755 = vmatpush1.bf16.msra.mxu0 %v1613_v5  ;;  %v1708_v5 = vld [vmem:[#allocation12 + $0xf4] ss:$8 sps:$4 sm:$0xff]  }
  0x8e   :  { %786 = vmatprep.mubr.bf16.mxu0 %v1358_v50  ;;  %756 = vmatprep.subr.bf16.mxu0 %v1618_v6  ;;  %v1676_v50 = vld [vmem:[#allocation12 + $0x50] ss:$8 sps:$4 sm:$0xff]  }
  0x8f   :  { %1257 = vmatpush1.bf16.msra.mxu1 %v1661_v37  ;;  %v1706_v6 = vld [vmem:[#allocation12 + $0xf0] ss:$8 sps:$4 sm:$0xff]  }
  0x90   :  { %1258 = vmatprep.subr.bf16.mxu1 %v1666_v39  ;;  %v1467_v39 = vld.sshfl [vmem:[#allocation5] sm:$0x33 pattern:$0x76325410] }
  0x91   :  { %757 = vmatpush1.bf16.msra.mxu0 %v1616_v7 }
  0x92   :  { %758 = vmatprep.subr.bf16.mxu0 %v1621_v8 }
  0x93   :  { %1259 = vmatpush1.bf16.msra.mxu1 %v1664_v40 }
  0x94   :  { %1260 = vmatprep.subr.bf16.mxu1 %v1669_v41  ;;  %v919_v41 = vcombine.high %v1467_v39, %v1467_v39 }
  0x95   :  { %759 = vmatpush1.bf16.msra.mxu0 %v1619_v9 }
  0x96   :  { %760 = vmatprep.subr.bf16.mxu0 %v1624_v10 }
  0x97   :  { %1261 = vmatpush1.bf16.msra.mxu1 %v1667_v42 }
  0x98   :  { %1262 = vmatprep.subr.bf16.mxu1 %v1672_v43 }
  0x99   :  { %761 = vmatpush1.bf16.msra.mxu0 %v1622_v11 }
  0x9a   :  { %762 = vmatprep.subr.bf16.mxu0 %v1627_v12 }
  0x9b   :  { %1263 = vmatpush1.bf16.msra.mxu1 %v1670_v44 }
  0x9c   :  { %1264 = vmatprep.subr.bf16.mxu1 %v1675_v45 }
  0x9d   :  { %763 = vmatpush1.bf16.msra.mxu0 %v1625_v13 }
  0x9e   :  { %764 = vmatprep.subr.bf16.mxu0 %v1630_v14 }
  0x9f   :  { %1265 = vmatpush1.bf16.msra.mxu1 %v1673_v48 }
  0xa0   :  { %1266 = vmatprep.subr.bf16.mxu1 %v1678_v49 }
  0xa1   :  { %765 = vmatpush1.bf16.msra.mxu0 %v1628_v15 }
  0xa2   :  { %766 = vmatprep.subr.bf16.mxu0 %v1633_v16 }
  0xa3   :  { %1267 = vmatpush1.bf16.msra.mxu1 %v1676_v50 }
  0xa4   :  { %1268 = vmatprep.subr.bf16.mxu1 %v1681_v51 }
  0xa5   :  { %767 = vmatpush1.bf16.msra.mxu0 %v1631_v17 }
  0xa6   :  { %768 = vmatprep.subr.bf16.mxu0 %v1636_v18 }
  0xa7   :  { %1269 = vmatpush1.bf16.msra.mxu1 %v1679_v52 }
  0xa8   :  { %1270 = vmatprep.subr.bf16.mxu1 %v1684_v53 }
  0xa9   :  { %769 = vmatpush1.bf16.msra.mxu0 %v1634_v19 }
  0xaa   :  { %770 = vmatprep.subr.bf16.mxu0 %v1639_v20 }
  0xab   :  { %1271 = vmatpush1.bf16.msra.mxu1 %v1682_v54 }
  0xac   :  { %1272 = vmatprep.subr.bf16.mxu1 %v1687_v55 }
  0xad   :  { %771 = vmatpush1.bf16.msra.mxu0 %v1637_v21 }
  0xae   :  { %772 = vmatprep.subr.bf16.mxu0 %v1642_v22 }
  0xaf   :  { %1273 = vmatpush1.bf16.msra.mxu1 %v1685_v56 }
  0xb0   :  { %1274 = vmatprep.subr.bf16.mxu1 %v1690_v57 }
  0xb1   :  { %773 = vmatpush1.bf16.msra.mxu0 %v1640_v23 }
  0xb2   :  { %774 = vmatprep.subr.bf16.mxu0 %v1645_v24 }
  0xb3   :  { %1275 = vmatpush1.bf16.msra.mxu1 %v1688_v58 }
  0xb4   :  { %1276 = vmatprep.subr.bf16.mxu1 %v1693_v59 }
  0xb5   :  { %775 = vmatpush1.bf16.msra.mxu0 %v1643_v25 }
  0xb6   :  { %776 = vmatprep.subr.bf16.mxu0 %v1648_v26 }
  0xb7   :  { %1277 = vmatpush1.bf16.msra.mxu1 %v1691_v60 }
  0xb8   :  { %1278 = vmatprep.subr.bf16.mxu1 %v1696_v62 }
  0xb9   :  { %777 = vmatpush1.bf16.msra.mxu0 %v1646_v27 }
  0xba   :  { %778 = vmatprep.subr.bf16.mxu0 %v1651_v28 }
  0xbb   :  { %1279 = vmatpush1.bf16.msra.mxu1 %v1694_v61 }
  0xbc   :  { %1280 = vmatprep.subr.bf16.mxu1 %v1699_v63 }
  0xbd   :  { %779 = vmatpush1.bf16.msra.mxu0 %v1649_v29 }
  0xbe   :  { %780 = vmatprep.subr.bf16.mxu0 %v1654_v30 }
  0xbf   :  { %1281 = vmatpush1.bf16.msra.mxu1 %v1697_v0 }
  0xc0   :  { %1282 = vmatprep.subr.bf16.mxu1 %v1702_v1 }
  0xc1   :  { %781 = vmatpush1.bf16.msra.mxu0 %v1652_v31 }
  0xc2   :  { %782 = vmatprep.subr.bf16.mxu0 %v1657_v32 }
  0xc3   :  { %1283 = vmatpush1.bf16.msra.mxu1 %v1700_v2 }
  0xc4   :  { %1284 = vmatprep.subr.bf16.mxu1 %v1705_v3 }
  0xc5   :  { %783 = vmatpush1.bf16.msra.mxu0 %v1655_v33 }
  0xc6   :  { %784 = vmatprep.subr.bf16.mxu0 %v1660_v34 }
  0xc9   :  { %785 = vmatpush1.bf16.msra.mxu0 %v1658_v35 }
  0xcc   :  { %787 = vmatmul.mubr.bf16.vlgmr.msra.gmra.mrb[4].mxu0 %v2009_v4  ;;  %v1703_v4 = vld [vmem:[#allocation12 + $0xe0] ss:$8 sps:$4 sm:$0xff]  }
  0xcd   :  { %1285 = vmatpush1.bf16.msra.mxu1 %v1703_v4 }
  0xce   :  { %1286 = vmatprep.subr.bf16.mxu1 %v1708_v5 }
  0xd1   :  { %1287 = vmatpush1.bf16.msra.mxu1 %v1706_v6 }
 0x15f   :  { %v702_v7 = vpop.f32.mrb[0].mxu0 }
 0x160   :  { %v745_v8 = vpop.f32.mrb[0].mxu1  ;;  %v1459_v9 = vmul.f32 -1.442695, %v702_v7  ;;  %v704_v11 = vpop.f32.mrb[1].mxu0 }
 0x161   :  { %v1455_v10 = vmul.f32 -1.442695, %v745_v8  ;;  %v747_v12 = vpop.f32.mrb[1].mxu1  ;;  %v1460_v13 = vmul.f32 -1.442695, %v704_v11  ;;  %v706_v15 = vpop.f32.mrb[2].mxu0 }
 0x162   :  { %v1456_v14 = vmul.f32 -1.442695, %v747_v12  ;;  %v749_v16 = vpop.f32.mrb[2].mxu1  ;;  %1709 = vpow2.f32 %v1459_v9  ;;  %v1461_v17 = vmul.f32 -1.442695, %v706_v15  ;;  %v708_v18 = vpop.f32.mrb[3].mxu0 }
 0x163   :  { %v751_v19 = vpop.f32.mrb[3].mxu1  ;;  %1711 = vpow2.f32 %v1455_v10  ;;  %v1457_v20 = vmul.f32 -1.442695, %v749_v16  ;;  %v1462_v21 = vmul.f32 -1.442695, %v708_v18 }
 0x164   :  { %1713 = vpow2.f32 %v1460_v13  ;;  %v1458_v22 = vmul.f32 -1.442695, %v751_v19 }
 0x165   :  { %1715 = vpow2.f32 %v1456_v14 }
 0x166   :  { %1717 = vpow2.f32 %v1461_v17 }
 0x167   :  { %1719 = vpow2.f32 %v1457_v20 }
 0x168   :  { %1721 = vpow2.f32 %v1462_v21 }
 0x169   :  { %1723 = vpow2.f32 %v1458_v22 }
 0x16c   :  { %v1710_v23 = vpop.eup %1709 }
 0x16d   :  { %v1712_v24 = vpop.eup %1711  ;;  %v845_v25 = vadd.f32 1.0, %v1710_v23 }
 0x16e   :  { %v1714_v26 = vpop.eup %1713  ;;  %v809_v27 = vadd.f32 1.0, %v1712_v24 }
 0x16f   :  { %v1716_v28 = vpop.eup %1715  ;;  %1725 = vrcp.f32 %v845_v25  ;;  %v846_v29 = vadd.f32 1.0, %v1714_v26 }
 0x170   :  { %v1718_v30 = vpop.eup %1717  ;;  %1727 = vrcp.f32 %v809_v27  ;;  %v810_v31 = vadd.f32 1.0, %v1716_v28 }
 0x171   :  { %v1720_v32 = vpop.eup %1719  ;;  %1729 = vrcp.f32 %v846_v29  ;;  %v847_v33 = vadd.f32 1.0, %v1718_v30 }
 0x172   :  { %v1722_v34 = vpop.eup %1721  ;;  %1731 = vrcp.f32 %v810_v31  ;;  %v811_v35 = vadd.f32 1.0, %v1720_v32 }
 0x173   :  { %v1724_v36 = vpop.eup %1723  ;;  %1733 = vrcp.f32 %v847_v33  ;;  %v848_v37 = vadd.f32 1.0, %v1722_v34 }
 0x174   :  { %1735 = vrcp.f32 %v811_v35  ;;  %v812_v38 = vadd.f32 1.0, %v1724_v36 }
 0x175   :  { %1737 = vrcp.f32 %v848_v37 }
 0x176   :  { %1739 = vrcp.f32 %v812_v38 }
 0x179   :  { %v1726_v40 = vpop.eup %1725 }
 0x17a   :  { %v1728_v42 = vpop.eup %1727  ;;  %v857_v43 = vmul.f32 %v1726_v40, %v702_v7 }
 0x17b   :  { %v1730_v44 = vpop.eup %1729  ;;  %v829_v45 = vsub.f32 1.0, %v1728_v42  ;;  %v922_v48 = vmul.f32 %v1728_v42, %v1467_v39 }
 0x17c   :  { %v1732_v49 = vpop.eup %1731  ;;  %v858_v50 = vmul.f32 %v1730_v44, %v704_v11 }
 0x17d   :  { %v1734_v51 = vpop.eup %1733  ;;  %v830_v52 = vsub.f32 1.0, %v1732_v49  ;;  %v923_v53 = vmul.f32 %v1732_v49, %v919_v41  ;;  %v861_v54 = vmul.f32 %v857_v43, %v829_v45  ;;  %v1907_v43 = vmov 1983009808  }
 0x17e   :  { %v2014_v55 = vpop.eup %1735  ;;  %v859_v56 = vmul.f32 %v1734_v51, %v706_v15  ;;  %v1048_v44 = vunpack.c.l.s4 %v1907_v43  ;;  %v1050_v45 = vlaneseq }
 0x17f   :  { %v1738_v57 = vpop.eup %1737  ;;  %v862_v58 = vmul.f32 %v858_v50, %v830_v52  ;;  %v831_v59 = vsub.f32 1.0, %v2014_v55  ;;  %v2017_v60 = vadd.f32 %v922_v48, %v861_v54 }
 0x180   :  { %v1740_v61 = vpop.eup %1739  ;;  %v860_v62 = vmul.f32 %v1738_v57, %v708_v18  ;;  %v1051_v57 = vshrl.u32 %v1050_v45, 7 }
 0x181   :  { %v832_v63 = vsub.f32 1.0, %v1740_v61  ;;  %v2019_v0 = vadd.f32 %v923_v53, %v862_v58  ;;  %v863_v1 = vmul.f32 %v859_v56, %v831_v59  ;;  %v930_v2 = vrot.slane %v2017_v60, 6 }
 0x182   :  { %v1049_v56 = vunpack.c.0.s8 %v1048_v44 }
 0x183   :  { %v864_v3 = vmul.f32 %v860_v62, %v832_v63  ;;  %v931_v4 = vrot.slane %v2019_v0, 6  ;;  %v934_v5 = vmul.f32 %v1728_v42, %v930_v2 }
 0x184   :  { %v1052_v63 = vsub.s32 %v1049_v56, %v1051_v57 }
 0x185   :  { %v935_v6 = vmul.f32 %v1732_v49, %v931_v4  ;;  %v2023_v7 = vadd.f32 %v934_v5, %v861_v54 }
 0x187   :  { %v2025_v8 = vadd.f32 %v935_v6, %v862_v58  ;;  %v942_v9 = vrot.slane %v2023_v7, 6 }
 0x189   :  { %v943_v10 = vrot.slane %v2025_v8, 6  ;;  %v946_v11 = vmul.f32 %v1728_v42, %v942_v9 }
 0x18b   :  { %v947_v12 = vmul.f32 %v1732_v49, %v943_v10  ;;  %v2029_v13 = vadd.f32 %v946_v11, %v861_v54 }
 0x18d   :  { %v2031_v14 = vadd.f32 %v947_v12, %v862_v58  ;;  %v954_v15 = vrot.slane %v2029_v13, 6 }
 0x18f   :  { %v955_v16 = vrot.slane %v2031_v14, 6  ;;  %v958_v17 = vmul.f32 %v1728_v42, %v954_v15 }
 0x191   :  { %v959_v18 = vmul.f32 %v1732_v49, %v955_v16  ;;  %v2035_v19 = vadd.f32 %v958_v17, %v861_v54 }
 0x193   :  { %v2037_v20 = vadd.f32 %v959_v18, %v862_v58  ;;  %v990_v21 = vrot.slane %v2035_v19, 6 }
 0x195   :  { %v991_v22 = vrot.slane %v2037_v20, 6  ;;  %v994_v23 = vmul.f32 %v2014_v55, %v990_v21 }
 0x197   :  { %v995_v24 = vmul.f32 %v1740_v61, %v991_v22  ;;  %v2042_v25 = vadd.f32 %v994_v23, %v863_v1 }
 0x199   :  { %v2044_v26 = vadd.f32 %v995_v24, %v864_v3  ;;  %v1002_v27 = vrot.slane %v2042_v25, 6 }
 0x19b   :  { %v1003_v28 = vrot.slane %v2044_v26, 6  ;;  %v1006_v29 = vmul.f32 %v2014_v55, %v1002_v27 }
 0x19d   :  { %v1007_v30 = vmul.f32 %v1740_v61, %v1003_v28  ;;  %v2049_v31 = vadd.f32 %v1006_v29, %v863_v1 }
 0x19f   :  { %v788_v32 = vpop.f32.mrb[4].mxu0  ;;  %v2051_v33 = vadd.f32 %v1007_v30, %v864_v3  ;;  %v1014_v34 = vrot.slane %v2049_v31, 6 }
 0x1a0   :  { %v1463_v35 = vmul.f32 -1.442695, %v788_v32  ;;  %v790_v36 = vpop.f32.mrb[5].mxu0 }
 0x1a1   :  { %v1464_v37 = vmul.f32 -1.442695, %v790_v36  ;;  %v792_v38 = vpop.f32.mrb[6].mxu0  ;;  %v1015_v39 = vrot.slane %v2051_v33, 6  ;;  %v1018_v40 = vmul.f32 %v2014_v55, %v1014_v34 }
 0x1a2   :  { %1741 = vpow2.f32 %v1463_v35  ;;  %v1465_v41 = vmul.f32 -1.442695, %v792_v38  ;;  %v794_v42 = vpop.f32.mrb[7].mxu0 }
 0x1a3   :  { %1743 = vpow2.f32 %v1464_v37  ;;  %v1466_v48 = vmul.f32 -1.442695, %v794_v42  ;;  %v1019_v49 = vmul.f32 %v1740_v61, %v1015_v39  ;;  %v1020_v50 = vadd.f32 %v1018_v40, %v863_v1 }
 0x1a4   :  { %1745 = vpow2.f32 %v1465_v41 }
 0x1a5   :  { %1747 = vpow2.f32 %v1466_v48  ;;  %v1021_v51 = vadd.f32 %v1019_v49, %v864_v3  ;;  %v1026_v52 = vrot.slane %v1020_v50, 6 }
 0x1a7   :  { %v1027_v53 = vrot.slane %v1021_v51, 6  ;;  %v1030_v54 = vmul.f32 %v2014_v55, %v1026_v52 }
 0x1a9   :  { %v1031_v58 = vmul.f32 %v1740_v61, %v1027_v53  ;;  %v1032_v59 = vadd.f32 %v1030_v54, %v863_v1 }
 0x1ab   :  { %v1033_v62 = vadd.f32 %v1031_v58, %v864_v3 }
 0x1ac   :  { %v1742_v2 = vpop.eup %1741 }
 0x1ad   :  { %v1744_v4 = vpop.eup %1743  ;;  %v881_v5 = vadd.f32 1.0, %v1742_v2  ;;  %v1046_v6 = vcombine.high %v1032_v59, %v1033_v62 }
 0x1ae   :  { %v1746_v9 = vpop.eup %1745  ;;  %v882_v10 = vadd.f32 1.0, %v1744_v4 }
 0x1af   :  { %v1748_v11 = vpop.eup %1747  ;;  %1749 = vrcp.f32 %v881_v5  ;;  %v883_v12 = vadd.f32 1.0, %v1746_v9  ;;  %v1053_v15 = vrot.slane %v1046_v6, %v1052_v63 }
 0x1b0   :  { %1751 = vrcp.f32 %v882_v10  ;;  %v884_v16 = vadd.f32 1.0, %v1748_v11 }
 0x1b1   :  { %1753 = vrcp.f32 %v883_v12  ;;  %v1054_v55 = vcombine.high %v1053_v15, %v1053_v15 }
 0x1b2   :  { %1755 = vrcp.f32 %v884_v16 }
 0x1b3   :  { %1056 = vst [vmem:[#allocation5] sm:$0xf] %v1054_v55  ;;  %1057 = vst [vmem:[#allocation15] sm:$0xf] %v1054_v55 }
 0x1b9   :  { %v1750_v61 = vpop.eup %1749 }
 0x1ba   :  { %v1752_v1 = vpop.eup %1751  ;;  %v926_v3 = vmul.f32 %v1750_v61, %v2017_v60  ;;  %v938_v17 = vmul.f32 %v1750_v61, %v2023_v7  ;;  %v950_v18 = vmul.f32 %v1750_v61, %v2029_v13  ;;  %v962_v21 = vmul.f32 %v1750_v61, %v2035_v19 }
 0x1bb   :  { %v1754_v22 = vpop.eup %1753  ;;  %v927_v23 = vmul.f32 %v1752_v1, %v2019_v0  ;;  %v939_v24 = vmul.f32 %v1752_v1, %v2025_v8  ;;  %v951_v27 = vmul.f32 %v1752_v1, %v2031_v14  ;;  %v963_v28 = vmul.f32 %v1752_v1, %v2037_v20 }
 0x1bc   :  { %v1756_v29 = vpop.eup %1755  ;;  %v965_v30 = vsel %vm964_vm0, %v926_v3, %v938_v17  ;;  %v998_v60 = vmul.f32 %v1754_v22, %v2042_v25  ;;  %v1010_v7 = vmul.f32 %v1754_v22, %v2049_v31  ;;  %v1022_v32 = vmul.f32 %v1754_v22, %v1020_v50 }
 0x1bd   :  { %v966_v13 = vsel %vm964_vm0, %v927_v23, %v939_v24  ;;  %v999_v19 = vmul.f32 %v1756_v29, %v2044_v26  ;;  %v1011_v0 = vmul.f32 %v1756_v29, %v2051_v33  ;;  %v1023_v34 = vmul.f32 %v1756_v29, %v1021_v51 }
 0x1be   :  { %v969_v8 = vsel %vm967_vm1, %v966_v13, %v951_v27  ;;  %v1035_v14 = vmul.f32 %v1756_v29, %v1033_v62  ;;  %v968_v20 = vsel %vm967_vm1, %v965_v30, %v950_v18  ;;  %v1034_v35 = vmul.f32 %v1754_v22, %v1032_v59 }
 0x1bf   :  { %v972_v36 = vsel %vm970_vm2, %v969_v8, %v963_v28  ;;  %v1037_v25 = vsel %vm964_vm0, %v999_v19, %v1011_v0  ;;  %v971_v31 = vsel %vm970_vm2, %v968_v20, %v962_v21  ;;  %v1036_v37 = vsel %vm964_vm0, %v998_v60, %v1010_v7 }
 0x1c0   :  { %v1039_v38 = vsel %vm967_vm1, %v1037_v25, %v1023_v34  ;;  %v1038_v26 = vsel %vm967_vm1, %v1036_v37, %v1022_v32 }
 0x1c1   :  { %v1041_v33 = vsel %vm970_vm2, %v1039_v38, %v1035_v14  ;;  %v1040_v39 = vsel %vm970_vm2, %v1038_v26, %v1034_v35 }
 0x1c2   :  { %v1063_v40 = vpack.c.bf16 %v1041_v33, %v972_v36  ;;  %v1062_v41 = vpack.c.bf16 %v1040_v39, %v971_v31 }
 0x1c4   :  { %1288 = vmatprep.mubr.bf16.mxu1 %v1063_v40 }
 0x1c5   :  { %1289 = vmatmul.mubr.bf16.vlgmr.msra.gmra.mrb[4].mxu1 %v1062_v41 }
 0x1c6   :  { %1856 = shalt.err (!%p1853_p8)
}
 0x1c7   :  { %s1857_s23 = scalar_lea.hbm %s2117_s5, 64 }
 0x1c8   :  { %p1858_p9 = scmp.ne.s32.totalorder %s2117_s5, %s1857_s23  ;;  %p1861_p10 = scmp.lt.u32.totalorder %s1857_s23, %s2117_s5 }
 0x1ca   :  { %p1863_p11 = pnand %p1861_p10, %p1858_p9 }
 0x1cc   :  { %1866 = shalt.err (!%p1863_p11)
}
 0x1cd   :  { %1342 = dma.vmem_to_hbm [thread:$0]  %s1340_s18, 64, %s2117_s5, [#allocation16]   ;;  %v1299_v42 = vunpack.c.l.bf16 %v2001_v46  ;;  %v1300_v43 = vunpack.c.h.bf16 %v2001_v46  ;;  %v1301_v44 = vunpack.c.l.bf16 %v2003_v47  ;;  %v1302_v48 = vunpack.c.h.bf16 %v2003_v47 }
 0x1ce   :  { %s1909_s21 = smov [#allocation14]  }
 0x1cf   :  { %s1326_s29 = sshll.u32 %s1909_s21, 4  ;;  %s1327_s29 = int_to_ptr.vmem [resolvable:$true] %s1326_s29 }
 0x1d0   :  { %s1867_s5 = scalar_lea.vmem %s1327_s29, 256  ;;  %p1872_p13 = scmp.lt.s32.totalorder %s1327_s29, %s1327_s29 }
 0x1d1   :  { %p1868_p12 = scmp.ne.s32.totalorder %s1327_s29, %s1867_s5  ;;  %p1873_p0 = scmp.lt.s32.totalorder %s1867_s5, %s1867_s5 }
 0x1d3   :  { %p1874_p1 = por %p1873_p0, %p1872_p13 }
 0x1d5   :  { %p1875_p2 = pnand %p1874_p1, %p1868_p12 }
 0x298   :  { %v1290_v45 = vpop.f32.mrb[4].mxu1 }
 0x299   :  { %v1303_v49 = vadd.f32 %v1299_v42, %v1290_v45  ;;  %v1292_v50 = vpop.f32.mrb[5].mxu1 }
 0x29a   :  { %v1304_v51 = vadd.f32 %v1300_v43, %v1292_v50  ;;  %v1294_v52 = vpop.f32.mrb[6].mxu1 }
 0x29b   :  { %v1305_v53 = vadd.f32 %v1301_v44, %v1294_v52  ;;  %v1296_v54 = vpop.f32.mrb[7].mxu1 }
 0x29c   :  { %v1502_v56 = vpack.c.bf16 %v1304_v51, %v1303_v49  ;;  %v1306_v57 = vadd.f32 %v1302_v48, %v1296_v54 }
 0x29e   :  { %1319 = vst [vmem:[#allocation14] sm:$0xff] %v1502_v56  ;;  %v1503_v58 = vpack.c.bf16 %v1306_v57, %v1305_v53 }
 0x2a0   :  { %1320 = vst [vmem:[#allocation14 + $0x8] sm:$0xff] %v1503_v58 }
 0x2a1   :  { %1878 = shalt.err (!%p1875_p2)
}
 0x2a2   :  { %s1879_s7 = scalar_lea.hbm %s2116_s4, 256 }
 0x2a3   :  { %p1880_p3 = scmp.ne.s32.totalorder %s2116_s4, %s1879_s7  ;;  %p1883_p4 = scmp.lt.u32.totalorder %s1879_s7, %s2116_s4 }
 0x2a5   :  { %p1885_p5 = pnand %p1883_p4, %p1880_p3 }
 0x2a7   :  { %1888 = shalt.err (!%p1885_p5)
}
 0x2a8   :  { %1332 = dma.vmem_to_hbm [thread:$0]  %s1327_s29, 256, %s2116_s4, [#allocation8], %s1901_s1, %s1901_s1, %s1902_s15  }
 0x2a9   :  { %1895 = dma.done.wait [#allocation8], 256  }
 0x2aa   :  { %1896 = vsyncadd [#allocation8], 4294967040 }
 0x2ab   :  { %1897 = dma.done.wait [#allocation16], 64  }
 0x2ac   :  { %1898 = vsyncadd [#allocation16], 4294967232 }
 0x2ad   :  { %1349 = vsyncpa [#allocation7], 1 }
 0x2ae   :  { %1350 = vsyncpa [#allocation10], 1 }
 0x2af   :  { %1351 = vsyncpa [#allocation13], 1 }
 0x2b0   :  { %1352 = vsyncpa [#allocation8], 1 }
 0x2b1   :  { %1353 = vsyncpa [#allocation16], 1 }

</bundles_post_ra>
